<compile_context>
chip_gen: v7x
topology: tpu7x:2x2x1
jax: 0.10.0
libtpu: 0.0.40
codegen_flags: <defaults>
</compile_context>

<pallas_src>
import functools

import jax
import jax.numpy as jnp
from jax.experimental import pallas as pl
from jax.experimental.pallas import tpu as pltpu


def _round_up(x, m):
    return (x + m - 1) // m * m


def _pick_batch_tile(B):
    # Fixed-size batch tiles with a cdiv grid; halve until >= 2 grid blocks
    # (so v7x's two TCs can split the batch), never below 128, and never
    # bigger than the (8-aligned) batch itself.
    tb = 512
    while tb > 128 and pl.cdiv(B, tb) < 2:
        tb //= 2
    return min(tb, _round_up(B, 8))


def _vmem_limit_bytes(tb, I, Hp, w_bytes, with_scratch):
    weights = (I + Hp) * 2 * Hp * w_bytes + 2 * (2 * Hp) * 4   # single-buffered
    io = 2 * tb * (I + Hp) * 4 + 2 * tb * Hp * 4               # double-buffered v/h/out
    scratch = tb * Hp * 4 if with_scratch else 0
    need = int((weights + io + scratch) * 1.5) + (8 << 20)
    return max(16 << 20, min(need, 64 << 20))                  # cap for v7x's 64 MiB/TC


def _pack_params(params, H, Hp, mxu_dtype):
    """Pack + zero-pad weights to Wv=[Wvx|Wvz] (I,2Hp), Wh=[Whn|Whz] (Hp,2Hp),
    biases bv=[bx|bz], bh=[bn|0] as (1,2Hp) f32 rows."""
    wvx, bx, whn, bn, wvz, whz, bz = params
    pad_c = Hp - H

    pad_cols = lambda w: jnp.pad(w, ((0, 0), (0, pad_c)))
    pad_vec = lambda b: jnp.pad(b, (0, pad_c))

    whn_p = jnp.pad(whn, ((0, pad_c), (0, pad_c)))
    whz_p = jnp.pad(whz, ((0, pad_c), (0, pad_c)))

    wv = jnp.concatenate([pad_cols(wvx), pad_cols(wvz)], axis=1).astype(mxu_dtype)
    wh = jnp.concatenate([whn_p, whz_p], axis=1).astype(mxu_dtype)
    bv = jnp.concatenate([pad_vec(bx), pad_vec(bz)]).reshape(1, 2 * Hp).astype(jnp.float32)
    bh = jnp.concatenate([pad_vec(bn), jnp.zeros((Hp,), bn.dtype)]
                         ).reshape(1, 2 * Hp).astype(jnp.float32)
    return wv, bv, wh, bh


# ---------------------------------------------------------------------------
# Single-step kernel (matches CARUCell.forward exactly)
# ---------------------------------------------------------------------------
def _caru_step_kernel(v_ref, h_ref, wv_ref, bv_ref, wh_ref, bh_ref, o_ref, *,
                      hidden, mxu_dtype):
    Hp = hidden
    h_in = h_ref[...]
    h32 = h_in.astype(jnp.float32)

    # Two fused lane-dense matmuls, f32 accumulation, one bias add each.
    vWb = jnp.dot(v_ref[...].astype(mxu_dtype), wv_ref[...],
                  preferred_element_type=jnp.float32) + bv_ref[...]
    hWb = jnp.dot(h_in.astype(mxu_dtype), wh_ref[...],
                  preferred_element_type=jnp.float32) + bh_ref[...]

    x = vWb[:, :Hp]                                  # v@Wvx + bx
    n = jnp.tanh(hWb[:, :Hp] + x)                    # tanh(h@Whn + bn + x)
    z = jax.nn.sigmoid(vWb[:, Hp:] + hWb[:, Hp:])    # sigmoid(h@Whz + v@Wvz + bz)
    l = jax.nn.sigmoid(x) * z
    o_ref[...] = (h32 + l * (n - h32)).astype(o_ref.dtype)


def caru_cell(v, h, params, *, mxu_dtype=jnp.bfloat16):
    """One CARU step.  v: [B, I], h: [B, H] -> new h: [B, H]."""
    B, I = v.shape
    H = h.shape[1]
    Hp = _round_up(H, 128)

    wv, bv, wh, bh = _pack_params(params, H, Hp, mxu_dtype)
    h_p = jnp.pad(h, ((0, 0), (0, Hp - H)))

    tb = _pick_batch_tile(B)
    nb = pl.cdiv(B, tb)
    w_bytes = jnp.dtype(mxu_dtype).itemsize

    resident = functools.partial(pl.BlockSpec, pipeline_mode=pl.Buffered(1))
    kernel = functools.partial(_caru_step_kernel, hidden=Hp, mxu_dtype=mxu_dtype)

    out = pl.pallas_call(
        kernel,
        out_shape=jax.ShapeDtypeStruct((B, Hp), h.dtype),
        grid=(nb,),
        in_specs=[
            pl.BlockSpec((tb, I), lambda i: (i, 0)),       # v  (batch-tiled)
            pl.BlockSpec((tb, Hp), lambda i: (i, 0)),      # h  (batch-tiled)
            resident((I, 2 * Hp), lambda i: (0, 0)),       # Wv (resident, single-buffered)
            resident((1, 2 * Hp), lambda i: (0, 0)),       # bv
            resident((Hp, 2 * Hp), lambda i: (0, 0)),      # Wh (resident)
            resident((1, 2 * Hp), lambda i: (0, 0)),       # bh
        ],
        out_specs=pl.BlockSpec((tb, Hp), lambda i: (i, 0)),
        compiler_params=pltpu.CompilerParams(
            dimension_semantics=("parallel",),
            vmem_limit_bytes=_vmem_limit_bytes(tb, I, Hp, w_bytes, False),
        ),
    )(v, h_p, wv, bv, wh, bh)
    return out[:, :H]


# ---------------------------------------------------------------------------
# Sequence kernel: time loop inside the kernel, h + weights stay resident.
# ---------------------------------------------------------------------------
def _caru_seq_kernel(v_ref, h0_ref, wv_ref, bv_ref, wh_ref, bh_ref, o_ref,
                     h_acc, *, hidden, mxu_dtype):
    Hp = hidden
    t = pl.program_id(1)

    @pl.when(t == 0)
    def _():
        h_acc[...] = h0_ref[...].astype(jnp.float32)

    h32 = h_acc[...]
    vWb = jnp.dot(v_ref[0].astype(mxu_dtype), wv_ref[...],
                  preferred_element_type=jnp.float32) + bv_ref[...]
    hWb = jnp.dot(h32.astype(mxu_dtype), wh_ref[...],
                  preferred_element_type=jnp.float32) + bh_ref[...]

    x = vWb[:, :Hp]
    n = jnp.tanh(hWb[:, :Hp] + x)
    z = jax.nn.sigmoid(vWb[:, Hp:] + hWb[:, Hp:])
    l = jax.nn.sigmoid(x) * z
    h_new = h32 + l * (n - h32)
    h_acc[...] = h_new

    @pl.when(t == pl.num_programs(1) - 1)
    def _():
        o_ref[...] = h_new.astype(o_ref.dtype)


def caru_sequence(v_seq, h0, params, *, mxu_dtype=jnp.bfloat16):
    """Apply the CARU cell over a sequence inside one kernel.
    v_seq: [T, B, I], h0: [B, H] -> final h: [B, H]."""
    T, B, I = v_seq.shape
    H = h0.shape[1]
    Hp = _round_up(H, 128)

    wv, bv, wh, bh = _pack_params(params, H, Hp, mxu_dtype)
    h0_p = jnp.pad(h0, ((0, 0), (0, Hp - H)))

    tb = _pick_batch_tile(B)
    nb = pl.cdiv(B, tb)
    w_bytes = jnp.dtype(mxu_dtype).itemsize

    resident = functools.partial(pl.BlockSpec, pipeline_mode=pl.Buffered(1))
    kernel = functools.partial(_caru_seq_kernel, hidden=Hp, mxu_dtype=mxu_dtype)

    out = pl.pallas_call(
        kernel,
        out_shape=jax.ShapeDtypeStruct((B, Hp), h0.dtype),
        grid=(nb, T),
        in_specs=[
            pl.BlockSpec((1, tb, I), lambda b, t: (t, b, 0)),   # v_t streamed over time
            pl.BlockSpec((tb, Hp), lambda b, t: (b, 0)),        # h0 (read once at t==0)
            resident((I, 2 * Hp), lambda b, t: (0, 0)),         # Wv (resident)
            resident((1, 2 * Hp), lambda b, t: (0, 0)),         # bv
            resident((Hp, 2 * Hp), lambda b, t: (0, 0)),        # Wh (resident)
            resident((1, 2 * Hp), lambda b, t: (0, 0)),         # bh
        ],
        out_specs=pl.BlockSpec((tb, Hp), lambda b, t: (b, 0)),  # written at last t only
        scratch_shapes=[pltpu.VMEM((tb, Hp), jnp.float32)],     # h carried across t
        compiler_params=pltpu.CompilerParams(
            dimension_semantics=("parallel", "arbitrary"),
            vmem_limit_bytes=_vmem_limit_bytes(tb, I, Hp, w_bytes, True),
        ),
    )(v_seq, h0_p, wv, bv, wh, bh)
    return out[:, :H]


def caru_ref(v, h, params):
    """Plain-JAX reference (mirrors the PyTorch forward)."""
    wvx, bx, whn, bn, wvz, whz, bz = params
    x = v @ wvx + bx
    n = jnp.tanh(h @ whn + bn + x)
    z = jax.nn.sigmoid(h @ whz + v @ wvz + bz)
    l = jax.nn.sigmoid(x) * z
    return (1.0 - l) * h + l * n


if __name__ == "__main__":
    B, I, H, T = 8, 16, 32, 6
    key = jax.random.PRNGKey(0)
    ks = jax.random.split(key, 10)

    v = jax.random.normal(ks[0], (B, I), dtype=jnp.float32)
    h = jax.random.normal(ks[1], (B, H), dtype=jnp.float32)
    v_seq = jax.random.normal(ks[9], (T, B, I), dtype=jnp.float32)

    scale = 0.1
    params = (
        scale * jax.random.normal(ks[2], (I, H), dtype=jnp.float32),  # Wvx
        scale * jax.random.normal(ks[3], (H,), dtype=jnp.float32),    # bx
        scale * jax.random.normal(ks[4], (H, H), dtype=jnp.float32),  # Whn
        scale * jax.random.normal(ks[5], (H,), dtype=jnp.float32),    # bn
        scale * jax.random.normal(ks[6], (I, H), dtype=jnp.float32),  # Wvz
        scale * jax.random.normal(ks[7], (H, H), dtype=jnp.float32),  # Whz
        scale * jax.random.normal(ks[8], (H,), dtype=jnp.float32),    # bz
    )

    ref = caru_ref(v, h, params)

    # Exact-precision path (f32 MXU inputs): tight tolerance.
    out_f32 = caru_cell(v, h, params, mxu_dtype=jnp.float32)
    jax.block_until_ready(out_f32)
    assert out_f32.shape == (B, H)
    assert jnp.allclose(out_f32, ref, atol=1e-5, rtol=1e-5), "f32 mismatch vs reference"

    # Default bf16-MXU path (f32 accumulation): quantization-sized tolerance.
    out_bf16 = caru_cell(v, h, params)
    jax.block_until_ready(out_bf16)
    assert jnp.allclose(out_bf16, ref, atol=5e-2, rtol=5e-2), "bf16 mismatch vs reference"

    # In-kernel time loop (weights + h resident across steps).
    out_seq = caru_sequence(v_seq, h, params, mxu_dtype=jnp.float32)
    jax.block_until_ready(out_seq)
    ref_h = h
    for t in range(T):
        ref_h = caru_ref(v_seq[t], ref_h, params)
    assert out_seq.shape == (B, H)
    assert jnp.allclose(out_seq, ref_h, atol=1e-4, rtol=1e-4), "sequence mismatch vs reference"

    print("KERNEL_OK")
</pallas_src>

<mosaic_0001>
module attributes {stable_mosaic.version = 11 : i64} {
  func.func @_caru_step_kernel(%arg0: i32, %arg1: memref<8x16xf32, #tpu.memory_space<vmem>>, %arg2: memref<8x128xf32, #tpu.memory_space<vmem>>, %arg3: memref<16x256xf32, #tpu.memory_space<vmem>>, %arg4: memref<1x256xf32, #tpu.memory_space<vmem>>, %arg5: memref<128x256xf32, #tpu.memory_space<vmem>>, %arg6: memref<1x256xf32, #tpu.memory_space<vmem>>, %arg7: memref<8x128xf32, #tpu.memory_space<vmem>>) attributes {dimension_semantics = [#tpu.dimension_semantics<parallel>], iteration_bounds = array<i64: 1>, scalar_prefetch = 0 : i64, scratch_operands = 0 : i64, tpu.core_type = #tpu.core_type<tc>, window_params = [{transform_indices = @transform_0, window_bounds = array<i64: 8, 16>}, {transform_indices = @transform_1, window_bounds = array<i64: 8, 128>}, {pipeline_mode = #tpu.pipeline_mode<synchronous>, transform_indices = @transform_2, window_bounds = array<i64: 16, 256>}, {pipeline_mode = #tpu.pipeline_mode<synchronous>, transform_indices = @transform_3, window_bounds = array<i64: 1, 256>}, {pipeline_mode = #tpu.pipeline_mode<synchronous>, transform_indices = @transform_4, window_bounds = array<i64: 128, 256>}, {pipeline_mode = #tpu.pipeline_mode<synchronous>, transform_indices = @transform_5, window_bounds = array<i64: 1, 256>}, {transform_indices = @transform_6, window_bounds = array<i64: 8, 128>}]} {
    %c0 = arith.constant 0 : index
    %c0_0 = arith.constant 0 : index
    %0 = vector.load %arg2[%c0, %c0_0] : memref<8x128xf32, #tpu.memory_space<vmem>>, vector<8x128xf32>
    %c0_1 = arith.constant 0 : index
    %c0_2 = arith.constant 0 : index
    %1 = vector.load %arg1[%c0_1, %c0_2] : memref<8x16xf32, #tpu.memory_space<vmem>>, vector<8x16xf32>
    %c0_3 = arith.constant 0 : index
    %c0_4 = arith.constant 0 : index
    %2 = vector.load %arg3[%c0_3, %c0_4] : memref<16x256xf32, #tpu.memory_space<vmem>>, vector<16x256xf32>
    %cst = arith.constant dense<0.000000e+00> : vector<8x256xf32>
    %3 = tpu.matmul %1, %2, %cst {dimension_numbers = #tpu.dot_dimension_numbers<[1], [0], [0], [1], [0, 0, 1, 1], [], []>} : vector<8x16xf32>, vector<16x256xf32>, vector<8x256xf32> -> vector<8x256xf32>
    %c0_5 = arith.constant 0 : index
    %c0_6 = arith.constant 0 : index
    %4 = vector.load %arg4[%c0_5, %c0_6] : memref<1x256xf32, #tpu.memory_space<vmem>>, vector<1x256xf32>
    %5 = vector.broadcast %4 : vector<1x256xf32> to vector<8x256xf32>
    %6 = arith.addf %3, %5 : vector<8x256xf32>
    %c0_7 = arith.constant 0 : index
    %c0_8 = arith.constant 0 : index
    %7 = vector.load %arg5[%c0_7, %c0_8] : memref<128x256xf32, #tpu.memory_space<vmem>>, vector<128x256xf32>
    %cst_9 = arith.constant dense<0.000000e+00> : vector<8x256xf32>
    %8 = tpu.matmul %0, %7, %cst_9 {dimension_numbers = #tpu.dot_dimension_numbers<[1], [0], [0], [1], [0, 0, 1, 1], [], []>} : vector<8x128xf32>, vector<128x256xf32>, vector<8x256xf32> -> vector<8x256xf32>
    %c0_10 = arith.constant 0 : index
    %c0_11 = arith.constant 0 : index
    %9 = vector.load %arg6[%c0_10, %c0_11] : memref<1x256xf32, #tpu.memory_space<vmem>>, vector<1x256xf32>
    %10 = vector.broadcast %9 : vector<1x256xf32> to vector<8x256xf32>
    %11 = arith.addf %8, %10 : vector<8x256xf32>
    %12 = vector.extract_strided_slice %6 {offsets = [0, 0], sizes = [8, 128], strides = [1, 1]} : vector<8x256xf32> to vector<8x128xf32>
    %13 = vector.extract_strided_slice %11 {offsets = [0, 0], sizes = [8, 128], strides = [1, 1]} : vector<8x256xf32> to vector<8x128xf32>
    %14 = arith.addf %13, %12 : vector<8x128xf32>
    %15 = math.tanh %14 : vector<8x128xf32>
    %16 = vector.extract_strided_slice %6 {offsets = [0, 128], sizes = [8, 128], strides = [1, 1]} : vector<8x256xf32> to vector<8x128xf32>
    %17 = vector.extract_strided_slice %11 {offsets = [0, 128], sizes = [8, 128], strides = [1, 1]} : vector<8x256xf32> to vector<8x128xf32>
    %18 = arith.addf %16, %17 : vector<8x128xf32>
    %19 = arith.negf %18 : vector<8x128xf32>
    %20 = math.exp %19 : vector<8x128xf32>
    %cst_12 = arith.constant 1.000000e+00 : f32
    %21 = vector.broadcast %cst_12 : f32 to vector<8x128xf32>
    %22 = arith.addf %21, %20 : vector<8x128xf32>
    %23 = arith.divf %21, %22 : vector<8x128xf32>
    %24 = arith.negf %12 : vector<8x128xf32>
    %25 = math.exp %24 : vector<8x128xf32>
    %cst_13 = arith.constant 1.000000e+00 : f32
    %26 = vector.broadcast %cst_13 : f32 to vector<8x128xf32>
    %27 = arith.addf %26, %25 : vector<8x128xf32>
    %28 = arith.divf %26, %27 : vector<8x128xf32>
    %29 = arith.mulf %28, %23 : vector<8x128xf32>
    %30 = arith.subf %15, %0 : vector<8x128xf32>
    %31 = arith.mulf %29, %30 : vector<8x128xf32>
    %32 = arith.addf %0, %31 : vector<8x128xf32>
    %c0_14 = arith.constant 0 : index
    %c0_15 = arith.constant 0 : index
    %33 = vector.load %arg7[%c0_14, %c0_15] : memref<8x128xf32, #tpu.memory_space<vmem>>, vector<8x128xf32>
    tpu.vector_store %arg7[%c0_14, %c0_15], %32 {strides = array<i32>} : memref<8x128xf32, #tpu.memory_space<vmem>>, vector<8x128xf32>,
    return
  }
  func.func @transform_0(%arg0: i32) -> (i32, i32) {
    %c0_i32 = arith.constant 0 : i32
    %c0_i32_0 = arith.constant 0 : i32
    return %arg0, %c0_i32 : i32, i32
  }
  func.func @transform_1(%arg0: i32) -> (i32, i32) {
    %c0_i32 = arith.constant 0 : i32
    %c0_i32_0 = arith.constant 0 : i32
    return %arg0, %c0_i32 : i32, i32
  }
  func.func @transform_2(%arg0: i32) -> (i32, i32) {
    %c0_i32 = arith.constant 0 : i32
    %c0_i32_0 = arith.constant 0 : i32
    %c0_i32_1 = arith.constant 0 : i32
    return %c0_i32, %c0_i32_0 : i32, i32
  }
  func.func @transform_3(%arg0: i32) -> (i32, i32) {
    %c0_i32 = arith.constant 0 : i32
    %c0_i32_0 = arith.constant 0 : i32
    %c0_i32_1 = arith.constant 0 : i32
    return %c0_i32, %c0_i32_0 : i32, i32
  }
  func.func @transform_4(%arg0: i32) -> (i32, i32) {
    %c0_i32 = arith.constant 0 : i32
    %c0_i32_0 = arith.constant 0 : i32
    %c0_i32_1 = arith.constant 0 : i32
    return %c0_i32, %c0_i32_0 : i32, i32
  }
  func.func @transform_5(%arg0: i32) -> (i32, i32) {
    %c0_i32 = arith.constant 0 : i32
    %c0_i32_0 = arith.constant 0 : i32
    %c0_i32_1 = arith.constant 0 : i32
    return %c0_i32, %c0_i32_0 : i32, i32
  }
  func.func @transform_6(%arg0: i32) -> (i32, i32) {
    %c0_i32 = arith.constant 0 : i32
    %c0_i32_0 = arith.constant 0 : i32
    return %arg0, %c0_i32 : i32, i32
  }
}

</mosaic_0001>

<bundles_post_ra>
// kernel: tpu_custom_call.1
= control target key start
LH: loop header
LB: loop body
LE: loop exit
PB: predicated region body
PF: predicated region fallthrough
CT: control target
= control target key end

     0   :  { %11 = vsyncpa [#allocation3], 0  ;;  %s604_s0 = inlined_call_operand.hbm [shape: f32[8,16], index: 0, kind: input, shape index: {}]   ;;  %s605_s1 = inlined_call_operand.hbm [shape: f32[8,128], index: 1, kind: input, shape index: {}]   ;;  %s606_s2 = inlined_call_operand.hbm [shape: f32[16,256], index: 2, kind: input, shape index: {}]   ;;  %s607_s3 = inlined_call_operand.vmem [shape: f32[1,256], index: 3, kind: input, shape index: {}]   ;;  %s608_s4 = inlined_call_operand.hbm [shape: f32[128,256], index: 4, kind: input, shape index: {}]   ;;  %s609_s5 = inlined_call_operand.vmem [shape: f32[1,256], index: 5, kind: input, shape index: {}]   ;;  %s610_s6 = inlined_call_operand.hbm [shape: f32[8,128], index: 6, kind: output, shape index: {}]  }
   0x1   :  { %12 = vsyncpa [#allocation6], 0 }
   0x2   :  { %13 = vsyncpa [#allocation9], 0 }
   0x3   :  { %14 = vsyncpa [#allocation4], 0  ;;  %s495_s21 = smov [#allocation5]   ;;  %s496_s23 = smov [#allocation2]  }
   0x4   :  { %s31_s22 = sshll.u32 %s495_s21, 4  ;;  %s21_s24 = sshll.u32 %s496_s23, 4  ;;  %s32_s22 = int_to_ptr.vmem [resolvable:$true] %s31_s22  ;;  %s22_s24 = int_to_ptr.vmem [resolvable:$true] %s21_s24 }
   0x5   :  { %s377_s27 = scalar_lea.hbm %s605_s1, 128 }
   0x6   :  { %p378_p0 = scmp.ne.s32.totalorder %s605_s1, %s377_s27  ;;  %p381_p1 = scmp.lt.u32.totalorder %s377_s27, %s605_s1 }
   0x8   :  { %p383_p2 = pnand %p381_p1, %p378_p0 }
   0xa   :  { %386 = shalt.err (!%p383_p2)
}
   0xb   :  { %s387_s8 = scalar_lea.vmem %s32_s22, 128  ;;  %p392_p4 = scmp.lt.s32.totalorder %s32_s22, %s32_s22 }
   0xc   :  { %p388_p3 = scmp.ne.s32.totalorder %s32_s22, %s387_s8  ;;  %p393_p5 = scmp.lt.s32.totalorder %s387_s8, %s387_s8 }
   0xe   :  { %p394_p6 = por %p393_p5, %p392_p4 }
  0x10   :  { %p395_p7 = pnand %p394_p6, %p388_p3 }
  0x12   :  { %398 = shalt.err (!%p395_p7)
}
  0x13   :  { %34 = dma.hbm_to_vmem [thread:$0]  %s605_s1, 128, %s32_s22, [#allocation6]  }
  0x14   :  { %s399_s13 = scalar_lea.hbm %s604_s0, 128 }
  0x15   :  { %p400_p8 = scmp.ne.s32.totalorder %s604_s0, %s399_s13  ;;  %p403_p9 = scmp.lt.u32.totalorder %s399_s13, %s604_s0 }
  0x17   :  { %p405_p10 = pnand %p403_p9, %p400_p8 }
  0x19   :  { %408 = shalt.err (!%p405_p10)
}
  0x1a   :  { %s409_s18 = scalar_lea.vmem %s22_s24, 128  ;;  %p414_p12 = scmp.lt.s32.totalorder %s22_s24, %s22_s24 }
  0x1b   :  { %p410_p11 = scmp.ne.s32.totalorder %s22_s24, %s409_s18  ;;  %p415_p13 = scmp.lt.s32.totalorder %s409_s18, %s409_s18 }
  0x1d   :  { %p416_p0 = por %p415_p13, %p414_p12 }
  0x1f   :  { %p417_p1 = pnand %p416_p0, %p410_p11 }
  0x21   :  { %420 = shalt.err (!%p417_p1)
}
  0x22   :  { %24 = dma.hbm_to_vmem [thread:$0]  %s604_s0, 128, %s22_s24, [#allocation3]  }
  0x23   :  { %s497_s20 = smov [#allocation7]   ;;  %s421_s25 = scalar_lea.hbm %s606_s2, 512 }
  0x24   :  { %s40_s21 = sshll.u32 %s497_s20, 4  ;;  %p422_p2 = scmp.ne.s32.totalorder %s606_s2, %s421_s25  ;;  %s41_s21 = int_to_ptr.vmem [resolvable:$true] %s40_s21 }
  0x25   :  { %p425_p3 = scmp.lt.u32.totalorder %s421_s25, %s606_s2 }
  0x27   :  { %p427_p4 = pnand %p425_p3, %p422_p2 }
  0x29   :  { %430 = shalt.err (!%p427_p4)
}
  0x2a   :  { %s431_s30 = scalar_lea.vmem %s41_s21, 512  ;;  %p436_p6 = scmp.lt.s32.totalorder %s41_s21, %s41_s21 }
  0x2b   :  { %p432_p5 = scmp.ne.s32.totalorder %s41_s21, %s431_s30  ;;  %p437_p7 = scmp.lt.s32.totalorder %s431_s30, %s431_s30 }
  0x2d   :  { %p438_p8 = por %p437_p7, %p436_p6 }
  0x2f   :  { %p439_p9 = pnand %p438_p8, %p432_p5 }
  0x31   :  { %442 = shalt.err (!%p439_p9)
}
  0x32   :  { %s498_s0 = smov 256   ;;  %s499_s24 = smov 16  }
  0x33   :  { %46 = dma.hbm_to_vmem [thread:$0]  %s606_s2, 512, %s41_s21, [#allocation6], %s498_s0, %s498_s0, %s499_s24  }
  0x34   :  { %s500_s9 = smov [#allocation8]   ;;  %s443_s13 = scalar_lea.hbm %s608_s4, 4096 }
  0x35   :  { %s54_s10 = sshll.u32 %s500_s9, 4  ;;  %p444_p10 = scmp.ne.s32.totalorder %s608_s4, %s443_s13  ;;  %s55_s10 = int_to_ptr.vmem [resolvable:$true] %s54_s10 }
  0x36   :  { %p447_p11 = scmp.lt.u32.totalorder %s443_s13, %s608_s4 }
  0x38   :  { %p449_p12 = pnand %p447_p11, %p444_p10 }
  0x3a   :  { %452 = shalt.err (!%p449_p12)
}
  0x3b   :  { %s453_s18 = scalar_lea.vmem %s55_s10, 4096  ;;  %p458_p0 = scmp.lt.s32.totalorder %s55_s10, %s55_s10 }
  0x3c   :  { %p454_p13 = scmp.ne.s32.totalorder %s55_s10, %s453_s18  ;;  %p459_p1 = scmp.lt.s32.totalorder %s453_s18, %s453_s18 }
  0x3e   :  { %p460_p2 = por %p459_p1, %p458_p0 }
  0x40   :  { %p461_p3 = pnand %p460_p2, %p454_p13 }
  0x42   :  { %464 = shalt.err (!%p461_p3)
}
  0x43   :  { %60 = dma.hbm_to_vmem [thread:$0]  %s608_s4, 4096, %s55_s10, [#allocation9], %s498_s0, %s498_s0, %s499_s24  }
  0x44   :  { %487 = dma.done.wait [#allocation3], 128  }
  0x45   :  { %488 = vsyncadd [#allocation3], 4294967168 }
  0x46   :  { %489 = dma.done.wait [#allocation6], 640  }
  0x47   :  { %490 = vsyncadd [#allocation6], 4294966656 }
  0x48   :  { %491 = dma.done.wait [#allocation9], 4096  }
  0x49   :  { %492 = vsyncadd [#allocation9], 4294963200  ;;  %v501_v0 = vmov 0.0   ;;  %v169_v1 = vld [vmem:[#allocation8 + $0x8] sm:$0xff]  ;;  %v171_v2 = vld [vmem:[#allocation8 + $0x18] sm:$0xff]  ;;  %vm93_vm0 = vcmask 130048   ;;  %v83_v57 = vlaneseq }
  0x4a   :  { %161 = vmatprep.mubr.f32.mxu0 %v501_v0  ;;  %276 = vmatprep.mubr.f32.mxu1 %v501_v0  ;;  %v168_v3 = vld [vmem:[#allocation8] sm:$0xff]  ;;  %v327_v4 = vpack.c.bf16 %v171_v2, %v169_v1  ;;  %v170_v5 = vld [vmem:[#allocation8 + $0x10] sm:$0xff]  ;;  %v173_v6 = vld [vmem:[#allocation8 + $0x28] sm:$0xff] }
  0x4b   :  { %v175_v7 = vld [vmem:[#allocation8 + $0x38] sm:$0xff]  ;;  %v329_v8 = vpack.c.bf16 %v170_v5, %v168_v3  ;;  %v172_v10 = vld [vmem:[#allocation8 + $0x20] sm:$0xff]  ;;  %v174_v11 = vld [vmem:[#allocation8 + $0x30] sm:$0xff]  ;;  %v84_v60 = vshrl.u32 %v83_v57, 7 }
  0x4c   :  { %v331_v9 = vpack.c.bf16 %v175_v7, %v173_v6  ;;  %v177_v12 = vld [vmem:[#allocation8 + $0x48] sm:$0xff]  ;;  %328 = vmatprep.subr.bf16.mxu1 %v327_v4  ;;  %v179_v13 = vld [vmem:[#allocation8 + $0x58] sm:$0xff]  ;;  %v333_v14 = vpack.c.bf16 %v174_v11, %v172_v10  ;;  %v176_v16 = vld [vmem:[#allocation8 + $0x40] sm:$0xff] }
  0x4d   :  { %330 = vmatpush1.bf16.msra.mxu1 %v329_v8  ;;  %v335_v15 = vpack.c.bf16 %v179_v13, %v177_v12  ;;  %v178_v17 = vld [vmem:[#allocation8 + $0x50] sm:$0xff]  ;;  %v181_v18 = vld [vmem:[#allocation8 + $0x68] sm:$0xff]  ;;  %v183_v19 = vld [vmem:[#allocation8 + $0x78] sm:$0xff]  ;;  %v85_v61 = vsub.s32 0, %v84_v60  ;;  %v89_v0 = vsub.s32 1, %v84_v60 }
  0x4e   :  { %332 = vmatprep.subr.bf16.mxu1 %v331_v9  ;;  %v337_v20 = vpack.c.bf16 %v178_v17, %v176_v16  ;;  %v180_v21 = vld [vmem:[#allocation8 + $0x60] sm:$0xff]  ;;  %v182_v22 = vld [vmem:[#allocation8 + $0x70] sm:$0xff]  ;;  %v339_v23 = vpack.c.bf16 %v183_v19, %v181_v18  ;;  %v185_v24 = vld [vmem:[#allocation8 + $0x88] sm:$0xff] }
  0x4f   :  { %v78_v25 = vld [vmem:[#allocation7 + $0x8] sm:$0xff]  ;;  %v80_v26 = vld [vmem:[#allocation7 + $0x18] sm:$0xff]  ;;  %v77_v29 = vld [vmem:[#allocation7] sm:$0xff]  ;;  %v341_v32 = vpack.c.bf16 %v182_v22, %v180_v21 }
  0x50   :  { %v187_v27 = vld [vmem:[#allocation8 + $0x98] sm:$0xff]  ;;  %v323_v28 = vpack.c.bf16 %v80_v26, %v78_v25  ;;  %v79_v30 = vld [vmem:[#allocation7 + $0x10] sm:$0xff]  ;;  %v184_v34 = vld [vmem:[#allocation8 + $0x80] sm:$0xff] }
  0x51   :  { %334 = vmatpush1.bf16.msra.mxu1 %v333_v14  ;;  %v325_v31 = vpack.c.bf16 %v79_v30, %v77_v29  ;;  %v343_v33 = vpack.c.bf16 %v187_v27, %v185_v24  ;;  %v186_v35 = vld [vmem:[#allocation8 + $0x90] sm:$0xff]  ;;  %v189_v37 = vld [vmem:[#allocation8 + $0xa8] sm:$0xff]  ;;  %v191_v38 = vld [vmem:[#allocation8 + $0xb8] sm:$0xff] }
  0x52   :  { %336 = vmatprep.subr.bf16.mxu1 %v335_v15  ;;  %324 = vmatprep.subr.bf16.mxu0 %v323_v28  ;;  %v76_v36 = vld [vmem:[#allocation2] sm:$0xff]  ;;  %v345_v39 = vpack.c.bf16 %v186_v35, %v184_v34  ;;  %v347_v40 = vpack.c.bf16 %v191_v38, %v189_v37  ;;  %v188_v41 = vld [vmem:[#allocation8 + $0xa0] sm:$0xff]  ;;  %v193_v43 = vld [vmem:[#allocation8 + $0xc8] sm:$0xff] }
  0x53   :  { %326 = vmatpush1.bf16.msra.mxu0 %v325_v31  ;;  %v190_v42 = vld [vmem:[#allocation8 + $0xb0] sm:$0xff]  ;;  %v195_v44 = vld [vmem:[#allocation8 + $0xd8] sm:$0xff]  ;;  %v192_v47 = vld [vmem:[#allocation8 + $0xc0] sm:$0xff] }
  0x54   :  { %v349_v45 = vpack.c.bf16 %v190_v42, %v188_v41  ;;  %v351_v46 = vpack.c.bf16 %v195_v44, %v193_v43  ;;  %v194_v48 = vld [vmem:[#allocation8 + $0xd0] sm:$0xff]  ;;  %v197_v49 = vld [vmem:[#allocation8 + $0xe8] sm:$0xff]  ;;  %v199_v50 = vld [vmem:[#allocation8 + $0xf8] sm:$0xff] }
  0x55   :  { %338 = vmatpush1.bf16.msra.mxu1 %v337_v20  ;;  %v353_v51 = vpack.c.bf16 %v194_v48, %v192_v47  ;;  %v355_v52 = vpack.c.bf16 %v199_v50, %v197_v49  ;;  %v196_v53 = vld [vmem:[#allocation8 + $0xe0] sm:$0xff]  ;;  %v198_v54 = vld [vmem:[#allocation8 + $0xf0] sm:$0xff]  ;;  %v75_v56 = vld [vmem:[#allocation5] sm:$0xff] }
  0x56   :  { %340 = vmatprep.subr.bf16.mxu1 %v339_v23  ;;  %320 = vmatmul.mubr.msk.f32.vlgmr.msra.gmra.mrb[0].mxu0 %vm93_vm0, %v76_v36  ;;  %v357_v55 = vpack.c.bf16 %v198_v54, %v196_v53  ;;  %v81_v62 = vld [vmem:[%s607_s3] sm:$0x3]  ;;  %s502_s3 = smov [#allocation10]  }
  0x57   :  { %v86_v63 = vrot.slane %v81_v62, %v85_v61  ;;  %v200_v1 = vld [vmem:[%s609_s5] sm:$0x3]  ;;  %v90_v3 = vrot.slane %v81_v62, %v89_v0  ;;  %s309_s5 = sshll.u32 %s502_s3, 4  ;;  %s310_s5 = int_to_ptr.vmem [resolvable:$true] %s309_s5 }
  0x58   :  { %v205_v4 = vrot.slane %v200_v1, %v85_v61  ;;  %v209_v5 = vrot.slane %v200_v1, %v89_v0  ;;  %s465_s22 = scalar_lea.vmem %s310_s5, 128  ;;  %p470_p5 = scmp.lt.s32.totalorder %s310_s5, %s310_s5 }
  0x59   :  { %342 = vmatpush1.bf16.msra.mxu1 %v341_v32  ;;  %p466_p4 = scmp.ne.s32.totalorder %s310_s5, %s465_s22  ;;  %p471_p6 = scmp.lt.s32.totalorder %s465_s22, %s465_s22 }
  0x5a   :  { %344 = vmatprep.subr.bf16.mxu1 %v343_v33 }
  0x5b   :  { %p472_p7 = por %p471_p6, %p470_p5 }
  0x5d   :  { %346 = vmatpush1.bf16.msra.mxu1 %v345_v39  ;;  %p473_p8 = pnand %p472_p7, %p466_p4 }
  0x5e   :  { %348 = vmatprep.subr.bf16.mxu1 %v347_v40 }
  0x61   :  { %350 = vmatpush1.bf16.msra.mxu1 %v349_v45 }
  0x62   :  { %352 = vmatprep.subr.bf16.mxu1 %v351_v46 }
  0x65   :  { %354 = vmatpush1.bf16.msra.mxu1 %v353_v51 }
  0x66   :  { %356 = vmatprep.subr.bf16.mxu1 %v355_v52 }
  0x69   :  { %358 = vmatpush1.bf16.msra.mxu1 %v357_v55 }
  0x6c   :  { %277 = vmatmul.mubr.f32.vlgmr.msra.gmra.mrb[0].mxu1 %v75_v56 }
 0x129   :  { %v163_v58 = vpop.f32.mrb[0].mxu0 }
 0x12a   :  { %v165_v59 = vpop.f32.mrb[1].mxu0  ;;  %v164_v2 = vadd.f32 %v163_v58, %v86_v63 }
 0x12b   :  { %v166_v7 = vadd.f32 %v165_v59, %v90_v3 }
 0x12c   :  { %v322_v6 = vmul.f32 -1.442695, %v164_v2 }
 0x12e   :  { %367 = vpow2.f32 %v322_v6 }
 0x138   :  { %v368_v15 = vpop.eup %367 }
 0x139   :  { %v295_v16 = vadd.f32 1.0, %v368_v15 }
 0x13f   :  { %v278_v8 = vpop.f32.mrb[0].mxu1 }
 0x140   :  { %v279_v9 = vadd.f32 %v278_v8, %v205_v4  ;;  %v280_v10 = vpop.f32.mrb[1].mxu1 }
 0x141   :  { %v281_v11 = vadd.f32 %v280_v10, %v209_v5 }
 0x142   :  { %v283_v12 = vadd.f32 %v279_v9, %v164_v2 }
 0x143   :  { %v285_v13 = vadd.f32 %v281_v11, %v166_v7 }
 0x145   :  { %v321_v14 = vmul.f32 -1.442695, %v285_v13 }
 0x147   :  { %369 = vpow2.f32 %v321_v14 }
 0x148   :  { %371 = vtanh.f32 %v283_v12 }
 0x149   :  { %373 = vrcp.f32 %v295_v16 }
 0x151   :  { %v370_v17 = vpop.eup %369 }
 0x152   :  { %v289_v18 = vadd.f32 1.0, %v370_v17  ;;  %v372_v19 = vpop.eup %371 }
 0x153   :  { %v374_v20 = vpop.eup %373  ;;  %v299_v23 = vsub.f32 %v372_v19, %v75_v56 }
 0x154   :  { %375 = vrcp.f32 %v289_v18 }
 0x15e   :  { %v376_v21 = vpop.eup %375 }
 0x15f   :  { %v298_v22 = vmul.f32 %v376_v21, %v374_v20 }
 0x161   :  { %v300_v24 = vmul.f32 %v299_v23, %v298_v22 }
 0x163   :  { %v301_v25 = vadd.f32 %v300_v24, %v75_v56 }
 0x165   :  { %302 = vst [vmem:[#allocation10] sm:$0xff] %v301_v25 }
 0x166   :  { %476 = shalt.err (!%p473_p8)
}
 0x167   :  { %s477_s26 = scalar_lea.hbm %s610_s6, 128 }
 0x168   :  { %p478_p9 = scmp.ne.s32.totalorder %s610_s6, %s477_s26  ;;  %p481_p10 = scmp.lt.u32.totalorder %s477_s26, %s610_s6 }
 0x16a   :  { %p483_p11 = pnand %p481_p10, %p478_p9 }
 0x16c   :  { %486 = shalt.err (!%p483_p11)
}
 0x16d   :  { %312 = dma.vmem_to_hbm [thread:$0]  %s310_s5, 128, %s610_s6, [#allocation4]  }
 0x16e   :  { %493 = dma.done.wait [#allocation4], 128  }
 0x16f   :  { %494 = vsyncadd [#allocation4], 4294967168 }
 0x170   :  { %316 = vsyncpa [#allocation3], 1 }
 0x171   :  { %317 = vsyncpa [#allocation6], 1 }
 0x172   :  { %318 = vsyncpa [#allocation9], 1 }
 0x173   :  { %319 = vsyncpa [#allocation4], 1 }

</bundles_post_ra>
